<compile_context>
chip_gen: v6e
topology: v6e:2x2x1
jax: 0.10.0
libtpu: 0.0.40
codegen_flags: <defaults>
</compile_context>

<pallas_src>
import functools
import math

import jax
import jax.numpy as jnp
from jax.experimental import pallas as pl
from jax.experimental.pallas import tpu as pltpu

_LANES = 128


def _fusion_kernel(w_ref, x_ref, o_ref, *, nums):
    """out_tile = sum_i w[i] * x_tile[i] for one lane-dense (TR, 128) tile.

    w_ref: SMEM (nums,)           fusion weights (scalars)
    x_ref: VMEM (nums, TR, 128)   stacked input tiles
    o_ref: VMEM (TR, 128)         fused output tile
    """
    acc = w_ref[0] * x_ref[0].astype(jnp.float32)
    for i in range(1, nums):                 # static unroll: nums VPU MACs
        acc = acc + w_ref[i] * x_ref[i].astype(jnp.float32)
    o_ref[...] = acc.astype(o_ref.dtype)


def _num_tensorcores():
    """Best-effort TensorCores-per-device (2 on v7x, 1 on v5e/v6e)."""
    try:
        info = pltpu.get_tpu_info()
        for attr in ("num_cores", "core_count", "num_tensorcores",
                     "tensorcore_count"):
            v = getattr(info, attr, None)
            if isinstance(v, int) and 0 < v <= 8:
                return v
    except Exception:
        pass
    try:
        if "v7" in jax.devices()[0].device_kind.lower():
            return 2
    except Exception:
        pass
    return 1


def _choose_tile_rows(rows, nums, in_itemsize, out_itemsize, n_cores,
                      vmem_budget_bytes=16 << 20, max_rows=1024):
    """Rows (of 128 lanes) per grid step, aligned to packed-sublane granularity."""
    row_align = 8 * max(1, 4 // in_itemsize)          # 8 f32, 16 bf16, 32 int8/fp8
    # Double-buffered residency per row of 128 lanes: nums input rows + 1 output row.
    per_row = 2 * (nums * in_itemsize + out_itemsize) * _LANES
    tr = (vmem_budget_bytes // per_row) // row_align * row_align
    tr = max(row_align, min(tr, max_rows))
    if n_cores > 1:
        # Multi-TC (v7x): aim for ~3 pipelined steps per core so fetch/compute/
        # writeback overlap, but never drop below ~256 rows (per-step overhead).
        target_steps = 3 * n_cores
        tr_split = -(-rows // target_steps)
        tr_split = -(-tr_split // row_align) * row_align
        tr_split = max(tr_split, min(256, tr))
        tr = min(tr, tr_split)
    # Single-TC chips (v5e/v6e): no forced split -- grid is a serial loop there.
    rows_aligned = -(-rows // row_align) * row_align
    return min(tr, rows_aligned)


def fusion_layer_forward(x, weights, *, tile_rows=None):
    """out = sum_i weights[i] * x[i].   x: (nums, ...), weights: (nums,)."""
    nums = x.shape[0]
    assert nums >= 1, "FusionLayer needs at least one input map"
    assert weights.shape == (nums,), weights.shape

    out_shape = x.shape[1:]
    out_dtype = jnp.result_type(x.dtype, weights.dtype)
    in_itemsize = jnp.dtype(x.dtype).itemsize
    out_itemsize = jnp.dtype(out_dtype).itemsize

    m = math.prod(out_shape)
    rows = -(-m // _LANES)                            # ceil(m / 128)
    m128 = rows * _LANES

    xf = x.reshape(nums, m)
    if m128 != m:                                     # pad only to the next 128 multiple
        xf = jnp.pad(xf, ((0, 0), (0, m128 - m)))
    xf = xf.reshape(nums, rows, _LANES)
    w = weights.astype(jnp.float32)

    if tile_rows is None:
        tr = _choose_tile_rows(rows, nums, in_itemsize, out_itemsize,
                               _num_tensorcores())
    else:
        tr = tile_rows
    grid = (pl.cdiv(rows, tr),)                       # ragged last block is masked

    cost = pl.CostEstimate(
        flops=2 * nums * rows * _LANES,
        bytes_accessed=rows * _LANES * (nums * in_itemsize + out_itemsize),
        transcendentals=0)

    out = pl.pallas_call(
        functools.partial(_fusion_kernel, nums=nums),
        out_shape=jax.ShapeDtypeStruct((rows, _LANES), out_dtype),
        grid=grid,
        in_specs=[
            pl.BlockSpec(memory_space=pltpu.MemorySpace.SMEM),       # weights
            # TODO(synk): sweep pipeline_mode=pl.Buffered(3) here on v7x only.
            pl.BlockSpec((nums, tr, _LANES), lambda r: (0, r, 0)),   # x tiles
        ],
        out_specs=pl.BlockSpec((tr, _LANES), lambda r: (r, 0)),
        compiler_params=pltpu.CompilerParams(
            dimension_semantics=("parallel",),
            vmem_limit_bytes=32 << 20),
        cost_estimate=cost,
    )(w, xf)

    if m128 != m:
        return out.reshape(m128)[:m].reshape(out_shape)
    return out.reshape(out_shape)


def _reference_forward(x, weights):
    """Pure-JAX mirror of FusionLayer.forward."""
    out = weights[0] * x[0]
    for i in range(1, x.shape[0]):
        out = out + weights[i] * x[i]
    return out


if __name__ == "__main__":
    nums = 6
    key = jax.random.PRNGKey(0)
    kx, kw, kx2 = jax.random.split(key, 3)

    # Primary case: nums stacked (N, C, H, W) feature maps, as the module uses.
    N, C, H, W = 2, 4, 16, 16
    x = jax.random.normal(kx, (nums, N, C, H, W), dtype=jnp.float32)
    w_default = jnp.full((nums,), 1.0 / nums, dtype=jnp.float32)   # _reset_parameters()
    w_rand = jax.random.normal(kw, (nums,), dtype=jnp.float32)     # "trained" weights

    for w in (w_default, w_rand):
        out = fusion_layer_forward(x, w)
        jax.block_until_ready(out)
        assert out.shape == (N, C, H, W), out.shape
        ref = _reference_forward(x, w)
        assert jnp.allclose(out, ref, atol=1e-5, rtol=1e-5), (
            float(jnp.max(jnp.abs(out - ref))))

    # Ragged case: flat size not a multiple of 128 AND rows not a multiple of
    # the tile -> exercises the no-tile-padding path (masked last block).
    x2 = jax.random.normal(kx2, (nums, 3, 5, 17, 9), dtype=jnp.float32)
    out2 = fusion_layer_forward(x2, w_rand, tile_rows=8)
    jax.block_until_ready(out2)
    ref2 = _reference_forward(x2, w_rand)
    assert out2.shape == ref2.shape, out2.shape
    assert jnp.allclose(out2, ref2, atol=1e-5, rtol=1e-5), (
        float(jnp.max(jnp.abs(out2 - ref2))))

    print("KERNEL_OK")
</pallas_src>

<mosaic_0001>
module attributes {stable_mosaic.version = 11 : i64} {
  func.func @_fusion_kernel(%arg0: i32, %arg1: memref<6xf32, #tpu.memory_space<smem>>, %arg2: memref<6x16x128xf32, #tpu.memory_space<vmem>>, %arg3: memref<16x128xf32, #tpu.memory_space<vmem>>) attributes {dimension_semantics = [#tpu.dimension_semantics<parallel>], iteration_bounds = array<i64: 1>, scalar_prefetch = 0 : i64, scratch_operands = 0 : i64, tpu.core_type = #tpu.core_type<tc>, window_params = [{transform_indices = @transform_0, window_bounds = array<i64: 6>}, {transform_indices = @transform_1, window_bounds = array<i64: 6, 16, 128>}, {transform_indices = @transform_2, window_bounds = array<i64: 16, 128>}]} {
    %c0 = arith.constant 0 : index
    %0 = memref.load %arg1[%c0] : memref<6xf32, #tpu.memory_space<smem>>
    %c0_0 = arith.constant 0 : index
    %c0_1 = arith.constant 0 : index
    %c0_2 = arith.constant 0 : index
    %1 = vector.load %arg2[%c0_0, %c0_1, %c0_2] : memref<6x16x128xf32, #tpu.memory_space<vmem>>, vector<1x16x128xf32>
    %2 = vector.shape_cast %1 : vector<1x16x128xf32> to vector<16x128xf32>
    %3 = vector.broadcast %0 : f32 to vector<16x128xf32>
    %4 = arith.mulf %3, %2 : vector<16x128xf32>
    %c1 = arith.constant 1 : index
    %5 = memref.load %arg1[%c1] : memref<6xf32, #tpu.memory_space<smem>>
    %c1_3 = arith.constant 1 : index
    %c0_4 = arith.constant 0 : index
    %c0_5 = arith.constant 0 : index
    %6 = vector.load %arg2[%c1_3, %c0_4, %c0_5] : memref<6x16x128xf32, #tpu.memory_space<vmem>>, vector<1x16x128xf32>
    %7 = vector.shape_cast %6 : vector<1x16x128xf32> to vector<16x128xf32>
    %8 = vector.broadcast %5 : f32 to vector<16x128xf32>
    %9 = arith.mulf %8, %7 : vector<16x128xf32>
    %10 = arith.addf %4, %9 : vector<16x128xf32>
    %c2 = arith.constant 2 : index
    %11 = memref.load %arg1[%c2] : memref<6xf32, #tpu.memory_space<smem>>
    %c2_6 = arith.constant 2 : index
    %c0_7 = arith.constant 0 : index
    %c0_8 = arith.constant 0 : index
    %12 = vector.load %arg2[%c2_6, %c0_7, %c0_8] : memref<6x16x128xf32, #tpu.memory_space<vmem>>, vector<1x16x128xf32>
    %13 = vector.shape_cast %12 : vector<1x16x128xf32> to vector<16x128xf32>
    %14 = vector.broadcast %11 : f32 to vector<16x128xf32>
    %15 = arith.mulf %14, %13 : vector<16x128xf32>
    %16 = arith.addf %10, %15 : vector<16x128xf32>
    %c3 = arith.constant 3 : index
    %17 = memref.load %arg1[%c3] : memref<6xf32, #tpu.memory_space<smem>>
    %c3_9 = arith.constant 3 : index
    %c0_10 = arith.constant 0 : index
    %c0_11 = arith.constant 0 : index
    %18 = vector.load %arg2[%c3_9, %c0_10, %c0_11] : memref<6x16x128xf32, #tpu.memory_space<vmem>>, vector<1x16x128xf32>
    %19 = vector.shape_cast %18 : vector<1x16x128xf32> to vector<16x128xf32>
    %20 = vector.broadcast %17 : f32 to vector<16x128xf32>
    %21 = arith.mulf %20, %19 : vector<16x128xf32>
    %22 = arith.addf %16, %21 : vector<16x128xf32>
    %c4 = arith.constant 4 : index
    %23 = memref.load %arg1[%c4] : memref<6xf32, #tpu.memory_space<smem>>
    %c4_12 = arith.constant 4 : index
    %c0_13 = arith.constant 0 : index
    %c0_14 = arith.constant 0 : index
    %24 = vector.load %arg2[%c4_12, %c0_13, %c0_14] : memref<6x16x128xf32, #tpu.memory_space<vmem>>, vector<1x16x128xf32>
    %25 = vector.shape_cast %24 : vector<1x16x128xf32> to vector<16x128xf32>
    %26 = vector.broadcast %23 : f32 to vector<16x128xf32>
    %27 = arith.mulf %26, %25 : vector<16x128xf32>
    %28 = arith.addf %22, %27 : vector<16x128xf32>
    %c5 = arith.constant 5 : index
    %29 = memref.load %arg1[%c5] : memref<6xf32, #tpu.memory_space<smem>>
    %c5_15 = arith.constant 5 : index
    %c0_16 = arith.constant 0 : index
    %c0_17 = arith.constant 0 : index
    %30 = vector.load %arg2[%c5_15, %c0_16, %c0_17] : memref<6x16x128xf32, #tpu.memory_space<vmem>>, vector<1x16x128xf32>
    %31 = vector.shape_cast %30 : vector<1x16x128xf32> to vector<16x128xf32>
    %32 = vector.broadcast %29 : f32 to vector<16x128xf32>
    %33 = arith.mulf %32, %31 : vector<16x128xf32>
    %34 = arith.addf %28, %33 : vector<16x128xf32>
    %c0_18 = arith.constant 0 : index
    %c0_19 = arith.constant 0 : index
    %35 = vector.load %arg3[%c0_18, %c0_19] : memref<16x128xf32, #tpu.memory_space<vmem>>, vector<16x128xf32>
    tpu.vector_store %arg3[%c0_18, %c0_19], %34 {strides = array<i32>} : memref<16x128xf32, #tpu.memory_space<vmem>>, vector<16x128xf32>,
    return
  }
  func.func @transform_0(%arg0: i32) -> i32 {
    %c0_i32 = arith.constant 0 : i32
    %c0_i32_0 = arith.constant 0 : i32
    return %c0_i32 : i32
  }
  func.func @transform_1(%arg0: i32) -> (i32, i32, i32) {
    %c0_i32 = arith.constant 0 : i32
    %c0_i32_0 = arith.constant 0 : i32
    %c0_i32_1 = arith.constant 0 : i32
    return %c0_i32, %arg0, %c0_i32_0 : i32, i32, i32
  }
  func.func @transform_2(%arg0: i32) -> (i32, i32) {
    %c0_i32 = arith.constant 0 : i32
    %c0_i32_0 = arith.constant 0 : i32
    return %arg0, %c0_i32 : i32, i32
  }
}

</mosaic_0001>

<bundles_post_ra>
// kernel: tpu_custom_call.1
= control target key start
LH: loop header
LB: loop body
LE: loop exit
PB: predicated region body
PF: predicated region fallthrough
CT: control target
= control target key end

     0   :  { %7 = vsyncpa [#allocation5], 0  ;;  %s213_s0 = inlined_call_operand.hbm [shape: f32[6], index: 0, kind: input, shape index: {}]   ;;  %s214_s1 = inlined_call_operand.hbm [shape: f32[6,16,128], index: 1, kind: input, shape index: {}]   ;;  %s215_s2 = inlined_call_operand.hbm [shape: f32[16,128], index: 2, kind: output, shape index: {}]  }
   0x1   :  { %8 = vsyncpa [#allocation3], 0 }
   0x2   :  { %9 = vsyncpa [#allocation4], 0  ;;  %s172_s9 = smov [#allocation2]   ;;  %s173_s12 = smov [#allocation6]  }
   0x3   :  { %17 = dma.hbm_to_smem %s213_s0, 16, %s172_s9, [#allocation5]  }
   0x4   :  { %s23_s13 = sshll.u32 %s173_s12, 4  ;;  %s24_s13 = int_to_ptr.vmem [resolvable:$true] %s23_s13 }
   0x5   :  { %s134_s14 = scalar_lea.vmem %s24_s13, 1536  ;;  %p139_p1 = scmp.lt.s32.totalorder %s24_s13, %s24_s13 }
   0x6   :  { %p135_p0 = scmp.ne.s32.totalorder %s24_s13, %s134_s14  ;;  %p140_p2 = scmp.lt.s32.totalorder %s134_s14, %s134_s14 }
   0x8   :  { %p141_p3 = por %p140_p2, %p139_p1 }
   0xa   :  { %p142_p4 = pnand %p141_p3, %p135_p0 }
   0xc   :  { %145 = shalt.err (!%p142_p4)
}
   0xd   :  { %s174_s15 = smov 128   ;;  %s175_s16 = smov 8  }
   0xe   :  { %29 = dma.hbm_to_vmem [thread:$0]  %s214_s1, 1536, %s24_s13, [#allocation3], %s174_s15, %s174_s15, %s175_s16  }
   0xf   :  { %166 = dma.done.wait [#allocation5], 16  }
  0x10   :  { %167 = vsyncadd [#allocation5], 4294967280 }
  0x11   :  { %168 = dma.done.wait [#allocation3], 1536  }
  0x12   :  { %169 = vsyncadd [#allocation3], 4294965760 }
  0x13   :  { %36 = sfence }
  0x14   :  { %s37_s0 = sld [smem:[#allocation2]]  ;;  %v38_v0 = vld [vmem:[#allocation6] sm:$0xff]  ;;  %v39_v1 = vld [vmem:[#allocation6 + $0x8] sm:$0xff]  ;;  %v45_v2 = vld [vmem:[#allocation6 + $0x10] sm:$0xff]  ;;  %s176_s1 = smov [#allocation7]  }
  0x15   :  { %s108_s19 = sld [smem:[#allocation2 + $0x1]]  ;;  %v46_v3 = vld [vmem:[#allocation6 + $0x18] sm:$0xff]  ;;  %v54_v5 = vld [vmem:[#allocation6 + $0x20] sm:$0xff]  ;;  %v55_v6 = vld [vmem:[#allocation6 + $0x28] sm:$0xff]  ;;  %s95_s24 = sshll.u32 %s176_s1, 4  ;;  %s96_s24 = int_to_ptr.vmem [resolvable:$true] %s95_s24 }
  0x16   :  { %s109_s20 = sld [smem:[#allocation2 + $0x2]]  ;;  %v63_v9 = vld [vmem:[#allocation6 + $0x30] sm:$0xff]  ;;  %v64_v14 = vld [vmem:[#allocation6 + $0x38] sm:$0xff]  ;;  %v72_v17 = vld [vmem:[#allocation6 + $0x40] sm:$0xff]  ;;  %s146_s25 = scalar_lea.vmem %s96_s24, 256 }
  0x17   :  { %s110_s21 = sld [smem:[#allocation2 + $0x3]]  ;;  %v73_v19 = vld [vmem:[#allocation6 + $0x48] sm:$0xff]  ;;  %v81_v24 = vld [vmem:[#allocation6 + $0x50] sm:$0xff]  ;;  %v82_v27 = vld [vmem:[#allocation6 + $0x58] sm:$0xff]  ;;  %p147_p5 = scmp.ne.s32.totalorder %s96_s24, %s146_s25 }
  0x18   :  { %s201_s22 = sld [smem:[#allocation2 + $0x4]]  ;;  %p151_p6 = scmp.lt.s32.totalorder %s96_s24, %s96_s24 }
  0x19   :  { %s203_s23 = sld [smem:[#allocation2 + $0x5]]  ;;  %p152_p7 = scmp.lt.s32.totalorder %s146_s25, %s146_s25 }
  0x1a   :  { %v40_v4 = vstv %s37_s0 }
  0x1b   :  { %v41_v7 = vmul.f32 %v40_v4, %v38_v0  ;;  %v47_v8 = vstv %s108_s19  ;;  %v42_v10 = vmul.f32 %v40_v4, %v39_v1  ;;  %p153_p8 = por %p152_p7, %p151_p6 }
  0x1c   :  { %v48_v11 = vmul.f32 %v47_v8, %v45_v2  ;;  %v56_v12 = vstv %s109_s20  ;;  %v49_v13 = vmul.f32 %v47_v8, %v46_v3 }
  0x1d   :  { %v57_v15 = vmul.f32 %v56_v12, %v54_v5  ;;  %v65_v16 = vstv %s110_s21  ;;  %v58_v18 = vmul.f32 %v56_v12, %v55_v6  ;;  %p154_p9 = pnand %p153_p8, %p147_p5 }
  0x1e   :  { %v50_v20 = vadd.f32 %v48_v11, %v41_v7  ;;  %v66_v21 = vmul.f32 %v65_v16, %v63_v9  ;;  %v74_v22 = vstv %s201_s22  ;;  %v51_v23 = vadd.f32 %v49_v13, %v42_v10 }
  0x1f   :  { %v83_v25 = vstv %s203_s23  ;;  %v67_v26 = vmul.f32 %v65_v16, %v64_v14  ;;  %v75_v29 = vmul.f32 %v74_v22, %v72_v17  ;;  %v76_v31 = vmul.f32 %v74_v22, %v73_v19 }
  0x20   :  { %v59_v28 = vadd.f32 %v57_v15, %v50_v20  ;;  %v60_v30 = vadd.f32 %v58_v18, %v51_v23  ;;  %v84_v33 = vmul.f32 %v83_v25, %v81_v24  ;;  %v85_v35 = vmul.f32 %v83_v25, %v82_v27 }
  0x22   :  { %v68_v32 = vadd.f32 %v66_v21, %v59_v28  ;;  %v69_v34 = vadd.f32 %v67_v26, %v60_v30 }
  0x24   :  { %v77_v36 = vadd.f32 %v75_v29, %v68_v32  ;;  %v78_v37 = vadd.f32 %v76_v31, %v69_v34 }
  0x26   :  { %v86_v38 = vadd.f32 %v84_v33, %v77_v36  ;;  %v87_v39 = vadd.f32 %v85_v35, %v78_v37 }
  0x28   :  { %88 = vst [vmem:[#allocation7] sm:$0xff] %v86_v38  ;;  %89 = vst [vmem:[#allocation7 + $0x8] sm:$0xff] %v87_v39 }
  0x29   :  { %157 = shalt.err (!%p154_p9)
}
  0x2a   :  { %101 = dma.vmem_to_hbm [thread:$0]  %s96_s24, 256, %s215_s2, [#allocation4], %s174_s15, %s174_s15, %s175_s16  }
  0x2b   :  { %170 = dma.done.wait [#allocation4], 256  }
  0x2c   :  { %171 = vsyncadd [#allocation4], 4294967040 }
  0x2d   :  { %105 = vsyncpa [#allocation3], 1 }
  0x2e   :  { %106 = vsyncpa [#allocation4], 1 }
  0x2f   :  { %107 = vsyncpa [#allocation5], 1 }

</bundles_post_ra>
